<compile_context>
chip_gen: v7x
topology: tpu7x:2x2x1
jax: 0.10.0
libtpu: 0.0.40
codegen_flags: <defaults>
</compile_context>

<pallas_src>
import math
import functools

import jax
import jax.numpy as jnp
from jax import lax
from jax.experimental import pallas as pl
from jax.experimental.pallas import tpu as pltpu


def _slot_mha_kernel(q_ref, k_ref, v_ref,
                     wq_ref, wk_ref, wv_ref,
                     bq_ref, bk_ref, bv_ref,
                     wo_ref, bo_ref,
                     o_ref, *, heads, d_k, matmul_dtype):
    """One batch-element grid step: project (full width), per-head slot attention,
    accumulate the output projection, write once."""
    dt = matmul_dtype
    xq = q_ref[0].astype(dt)            # (S_q, E)
    xk = k_ref[0].astype(dt)            # (S_kv, E)
    xv = v_ref[0].astype(dt)            # (S_kv, E)

    # Full-width in-projections (contraction E, output E -> MXU-efficient).
    # 1/sqrt(d_k) is already folded into wq/bq by the wrapper.
    qp = jnp.dot(xq, wq_ref[...], preferred_element_type=jnp.float32) + bq_ref[...]  # (S_q, E)
    kp = jnp.dot(xk, wk_ref[...], preferred_element_type=jnp.float32) + bk_ref[...]  # (S_kv, E)
    vp = jnp.dot(xv, wv_ref[...], preferred_element_type=jnp.float32) + bv_ref[...]  # (S_kv, E)

    acc = None
    for h in range(heads):              # static unroll; all slices below are static
        sl = slice(h * d_k, (h + 1) * d_k)
        qh = qp[:, sl].astype(dt)       # (S_q, d_k)
        kh = kp[:, sl].astype(dt)       # (S_kv, d_k)
        vh = vp[:, sl].astype(dt)       # (S_kv, d_k)

        # scores = q @ k^T : contract the last dims (no explicit transpose).
        s = lax.dot_general(qh, kh,
                            dimension_numbers=(((1,), (1,)), ((), ())),
                            preferred_element_type=jnp.float32)   # (S_q, S_kv)

        # Slot softmax: softmax over the QUERY axis (0), then renormalize over keys (1).
        s = s - jnp.max(s, axis=0, keepdims=True)
        e = jnp.exp(s)
        a = e * pl.reciprocal(jnp.sum(e, axis=0, keepdims=True), approx=True)
        a = a * pl.reciprocal(jnp.sum(a, axis=1, keepdims=True), approx=True)

        ctx = jnp.dot(a.astype(dt), vh,
                      preferred_element_type=jnp.float32)         # (S_q, d_k)

        # Per-head slice of the output projection (sublane slice of W_o^T),
        # accumulated over heads == concat + single out-projection.
        part = jnp.dot(ctx.astype(dt), wo_ref[sl, :],
                       preferred_element_type=jnp.float32)        # (S_q, E)
        acc = part if acc is None else acc + part

    o_ref[0] = (acc + bo_ref[...]).astype(o_ref.dtype)


def slot_mha_forward(q, k, v, params, *, heads, matmul_dtype=jnp.float32):
    """q: (B, S_q, E); k, v: (B, S_kv, E). Returns (B, S_q, E).

    matmul_dtype=jnp.bfloat16 is recommended on v6e/v7x for ~2x MXU throughput
    (f32 accumulation is kept either way); default f32 for exact parity.
    """
    B, S_q, E = q.shape
    _, S_kv, _ = k.shape
    assert v.shape == k.shape and E % heads == 0
    d_k = E // heads
    scale = 1.0 / math.sqrt(d_k)

    in_w = params["in_proj_weight"]      # (3E, E), packed q|k|v along dim 0
    in_b = params["in_proj_bias"]        # (3E,)
    out_w = params["out_proj_weight"]    # (E, E)
    out_b = params["out_proj_bias"]      # (E,)

    # Wrapper-side weight prep (free; done once): transpose for x @ W^T form,
    # fold the 1/sqrt(d_k) scale into the q projection, cast matmul operands.
    wqT = (in_w[:E].T * scale).astype(matmul_dtype)     # (E, E)
    wkT = in_w[E:2 * E].T.astype(matmul_dtype)          # (E, E)
    wvT = in_w[2 * E:].T.astype(matmul_dtype)           # (E, E)
    bq = (in_b[:E] * scale).reshape(1, E)
    bk = in_b[E:2 * E].reshape(1, E)
    bv = in_b[2 * E:].reshape(1, E)
    woT = out_w.T.astype(matmul_dtype)                  # (E, E)
    bo = out_b.reshape(1, E)

    q_spec = pl.BlockSpec((1, S_q, E), lambda b: (b, 0, 0))
    kv_spec = pl.BlockSpec((1, S_kv, E), lambda b: (b, 0, 0))
    w_spec = pl.BlockSpec((E, E), lambda b: (0, 0))     # resident across the grid
    b_spec = pl.BlockSpec((1, E), lambda b: (0, 0))
    out_spec = pl.BlockSpec((1, S_q, E), lambda b: (b, 0, 0))

    # Advisory cost estimate for XLA scheduling around the custom call.
    flops = int(2 * B * (S_q + 2 * S_kv) * E * E       # in-projections
                + 4 * B * heads * S_q * S_kv * d_k     # scores + context
                + 2 * B * S_q * E * E)                 # out-projection
    transcendentals = int(B * heads * S_q * S_kv)
    bytes_accessed = int(4 * (B * S_q * E * 2 + 2 * B * S_kv * E
                              + 4 * E * E + 4 * E))

    kernel = functools.partial(_slot_mha_kernel, heads=heads, d_k=d_k,
                               matmul_dtype=matmul_dtype)

    return pl.pallas_call(
        kernel,
        out_shape=jax.ShapeDtypeStruct((B, S_q, E), q.dtype),
        grid_spec=pltpu.PrefetchScalarGridSpec(
            num_scalar_prefetch=0,
            grid=(B,),
            in_specs=[q_spec, kv_spec, kv_spec,
                      w_spec, w_spec, w_spec,
                      b_spec, b_spec, b_spec,
                      w_spec, b_spec],
            out_specs=out_spec),
        compiler_params=pltpu.CompilerParams(
            dimension_semantics=("parallel",)),
        cost_estimate=pl.CostEstimate(flops=flops,
                                      transcendentals=transcendentals,
                                      bytes_accessed=bytes_accessed),
    )(q, k, v, wqT, wkT, wvT, bq, bk, bv, woT, bo)


def init_params(key, d_model):
    """Deterministic parameter init mirroring the module's __init__."""
    k1, k2, k3 = jax.random.split(key, 3)
    # xavier_uniform_ on (3E, E): bound = sqrt(6 / (fan_in + fan_out)) = sqrt(6/(4E))
    bound_in = math.sqrt(6.0 / (d_model + 3 * d_model))
    in_proj_weight = jax.random.uniform(
        k1, (3 * d_model, d_model), jnp.float32, -bound_in, bound_in)
    in_proj_bias = jnp.zeros((3 * d_model,), jnp.float32)
    # nn.Linear default init: bound = 1/sqrt(fan_in) for weight and bias
    bound_o = 1.0 / math.sqrt(d_model)
    out_proj_weight = jax.random.uniform(
        k2, (d_model, d_model), jnp.float32, -bound_o, bound_o)
    out_proj_bias = jax.random.uniform(
        k3, (d_model,), jnp.float32, -bound_o, bound_o)
    return {
        "in_proj_weight": in_proj_weight,
        "in_proj_bias": in_proj_bias,
        "out_proj_weight": out_proj_weight,
        "out_proj_bias": out_proj_bias,
    }


def slot_mha_reference(q, k, v, params, *, heads):
    """Pure-JAX reference identical to the PyTorch forward (eval mode, mask=None)."""
    B, S_q, E = q.shape
    d_k = E // heads
    w, b = params["in_proj_weight"], params["in_proj_bias"]
    qp = q @ w[:E].T + b[:E]
    kp = k @ w[E:2 * E].T + b[E:2 * E]
    vp = v @ w[2 * E:].T + b[2 * E:]

    def split_heads(x):
        B_, S_, _ = x.shape
        return x.reshape(B_, S_, heads, d_k).transpose(0, 2, 1, 3)   # (B, h, S, d_k)

    qh, kh, vh = split_heads(qp), split_heads(kp), split_heads(vp)
    scores = jnp.einsum("bhqd,bhkd->bhqk", qh, kh) / math.sqrt(d_k)
    attn = jax.nn.softmax(scores, axis=-2)                  # softmax over query axis
    attn = attn / jnp.sum(attn, axis=-1, keepdims=True)     # renormalize over keys
    ctx = jnp.einsum("bhqk,bhkd->bhqd", attn, vh)
    concat = ctx.transpose(0, 2, 1, 3).reshape(B, S_q, E)
    return concat @ params["out_proj_weight"].T + params["out_proj_bias"]


if __name__ == "__main__":
    B, heads, d_model = 2, 4, 32
    S_q, S_kv = 8, 16            # slot queries vs. input keys/values

    key = jax.random.PRNGKey(0)
    kq, kk, kv, kp = jax.random.split(key, 4)
    q = jax.random.normal(kq, (B, S_q, d_model), jnp.float32)
    k = jax.random.normal(kk, (B, S_kv, d_model), jnp.float32)
    v = jax.random.normal(kv, (B, S_kv, d_model), jnp.float32)
    params = init_params(kp, d_model)

    out = slot_mha_forward(q, k, v, params, heads=heads)
    out = jax.block_until_ready(out)

    ref = slot_mha_reference(q, k, v, params, heads=heads)
    assert out.shape == (B, S_q, d_model)
    # Tolerance loosened slightly for pl.reciprocal(approx=True) in the softmax.
    assert jnp.allclose(out, ref, atol=2e-2, rtol=2e-2), "mismatch vs reference"

    print("KERNEL_OK")
</pallas_src>

<mosaic_0001>
module attributes {stable_mosaic.version = 11 : i64} {
  func.func @_slot_mha_kernel(%arg0: i32, %arg1: memref<1x8x32xf32, #tpu.memory_space<vmem>>, %arg2: memref<1x16x32xf32, #tpu.memory_space<vmem>>, %arg3: memref<1x16x32xf32, #tpu.memory_space<vmem>>, %arg4: memref<32x32xf32, #tpu.memory_space<vmem>>, %arg5: memref<32x32xf32, #tpu.memory_space<vmem>>, %arg6: memref<32x32xf32, #tpu.memory_space<vmem>>, %arg7: memref<1x32xf32, #tpu.memory_space<vmem>>, %arg8: memref<1x32xf32, #tpu.memory_space<vmem>>, %arg9: memref<1x32xf32, #tpu.memory_space<vmem>>, %arg10: memref<32x32xf32, #tpu.memory_space<vmem>>, %arg11: memref<1x32xf32, #tpu.memory_space<vmem>>, %arg12: memref<1x8x32xf32, #tpu.memory_space<vmem>>) attributes {dimension_semantics = [#tpu.dimension_semantics<parallel>], iteration_bounds = array<i64: 2>, scalar_prefetch = 0 : i64, scratch_operands = 0 : i64, tpu.core_type = #tpu.core_type<tc>, window_params = [{transform_indices = @transform_0, window_bounds = array<i64: 1, 8, 32>}, {transform_indices = @transform_1, window_bounds = array<i64: 1, 16, 32>}, {transform_indices = @transform_2, window_bounds = array<i64: 1, 16, 32>}, {pipeline_mode = #tpu.pipeline_mode<synchronous>, transform_indices = @transform_3, window_bounds = array<i64: 32, 32>}, {pipeline_mode = #tpu.pipeline_mode<synchronous>, transform_indices = @transform_4, window_bounds = array<i64: 32, 32>}, {pipeline_mode = #tpu.pipeline_mode<synchronous>, transform_indices = @transform_5, window_bounds = array<i64: 32, 32>}, {pipeline_mode = #tpu.pipeline_mode<synchronous>, transform_indices = @transform_6, window_bounds = array<i64: 1, 32>}, {pipeline_mode = #tpu.pipeline_mode<synchronous>, transform_indices = @transform_7, window_bounds = array<i64: 1, 32>}, {pipeline_mode = #tpu.pipeline_mode<synchronous>, transform_indices = @transform_8, window_bounds = array<i64: 1, 32>}, {pipeline_mode = #tpu.pipeline_mode<synchronous>, transform_indices = @transform_9, window_bounds = array<i64: 32, 32>}, {pipeline_mode = #tpu.pipeline_mode<synchronous>, transform_indices = @transform_10, window_bounds = array<i64: 1, 32>}, {transform_indices = @transform_11, window_bounds = array<i64: 1, 8, 32>}]} {
    %c0 = arith.constant 0 : index
    %c0_0 = arith.constant 0 : index
    %c0_1 = arith.constant 0 : index
    %0 = vector.load %arg1[%c0, %c0_0, %c0_1] : memref<1x8x32xf32, #tpu.memory_space<vmem>>, vector<1x8x32xf32>
    %1 = vector.shape_cast %0 : vector<1x8x32xf32> to vector<8x32xf32>
    %c0_2 = arith.constant 0 : index
    %c0_3 = arith.constant 0 : index
    %c0_4 = arith.constant 0 : index
    %2 = vector.load %arg2[%c0_2, %c0_3, %c0_4] : memref<1x16x32xf32, #tpu.memory_space<vmem>>, vector<1x16x32xf32>
    %3 = vector.shape_cast %2 : vector<1x16x32xf32> to vector<16x32xf32>
    %c0_5 = arith.constant 0 : index
    %c0_6 = arith.constant 0 : index
    %c0_7 = arith.constant 0 : index
    %4 = vector.load %arg3[%c0_5, %c0_6, %c0_7] : memref<1x16x32xf32, #tpu.memory_space<vmem>>, vector<1x16x32xf32>
    %5 = vector.shape_cast %4 : vector<1x16x32xf32> to vector<16x32xf32>
    %c0_8 = arith.constant 0 : index
    %c0_9 = arith.constant 0 : index
    %6 = vector.load %arg4[%c0_8, %c0_9] : memref<32x32xf32, #tpu.memory_space<vmem>>, vector<32x32xf32>
    %cst = arith.constant dense<0.000000e+00> : vector<8x32xf32>
    %7 = tpu.matmul %1, %6, %cst {dimension_numbers = #tpu.dot_dimension_numbers<[1], [0], [0], [1], [0, 0, 1, 1], [], []>} : vector<8x32xf32>, vector<32x32xf32>, vector<8x32xf32> -> vector<8x32xf32>
    %c0_10 = arith.constant 0 : index
    %c0_11 = arith.constant 0 : index
    %8 = vector.load %arg7[%c0_10, %c0_11] : memref<1x32xf32, #tpu.memory_space<vmem>>, vector<1x32xf32>
    %9 = vector.broadcast %8 : vector<1x32xf32> to vector<8x32xf32>
    %10 = arith.addf %7, %9 : vector<8x32xf32>
    %c0_12 = arith.constant 0 : index
    %c0_13 = arith.constant 0 : index
    %11 = vector.load %arg5[%c0_12, %c0_13] : memref<32x32xf32, #tpu.memory_space<vmem>>, vector<32x32xf32>
    %cst_14 = arith.constant dense<0.000000e+00> : vector<16x32xf32>
    %12 = tpu.matmul %3, %11, %cst_14 {dimension_numbers = #tpu.dot_dimension_numbers<[1], [0], [0], [1], [0, 0, 1, 1], [], []>} : vector<16x32xf32>, vector<32x32xf32>, vector<16x32xf32> -> vector<16x32xf32>
    %c0_15 = arith.constant 0 : index
    %c0_16 = arith.constant 0 : index
    %13 = vector.load %arg8[%c0_15, %c0_16] : memref<1x32xf32, #tpu.memory_space<vmem>>, vector<1x32xf32>
    %14 = vector.broadcast %13 : vector<1x32xf32> to vector<16x32xf32>
    %15 = arith.addf %12, %14 : vector<16x32xf32>
    %c0_17 = arith.constant 0 : index
    %c0_18 = arith.constant 0 : index
    %16 = vector.load %arg6[%c0_17, %c0_18] : memref<32x32xf32, #tpu.memory_space<vmem>>, vector<32x32xf32>
    %cst_19 = arith.constant dense<0.000000e+00> : vector<16x32xf32>
    %17 = tpu.matmul %5, %16, %cst_19 {dimension_numbers = #tpu.dot_dimension_numbers<[1], [0], [0], [1], [0, 0, 1, 1], [], []>} : vector<16x32xf32>, vector<32x32xf32>, vector<16x32xf32> -> vector<16x32xf32>
    %c0_20 = arith.constant 0 : index
    %c0_21 = arith.constant 0 : index
    %18 = vector.load %arg9[%c0_20, %c0_21] : memref<1x32xf32, #tpu.memory_space<vmem>>, vector<1x32xf32>
    %19 = vector.broadcast %18 : vector<1x32xf32> to vector<16x32xf32>
    %20 = arith.addf %17, %19 : vector<16x32xf32>
    %21 = vector.extract_strided_slice %10 {offsets = [0, 0], sizes = [8, 8], strides = [1, 1]} : vector<8x32xf32> to vector<8x8xf32>
    %22 = vector.extract_strided_slice %15 {offsets = [0, 0], sizes = [16, 8], strides = [1, 1]} : vector<16x32xf32> to vector<16x8xf32>
    %23 = vector.extract_strided_slice %20 {offsets = [0, 0], sizes = [16, 8], strides = [1, 1]} : vector<16x32xf32> to vector<16x8xf32>
    %cst_22 = arith.constant dense<0.000000e+00> : vector<8x16xf32>
    %24 = tpu.matmul %21, %22, %cst_22 {dimension_numbers = #tpu.dot_dimension_numbers<[1], [1], [0], [0], [0, 0, 1, 0], [], []>} : vector<8x8xf32>, vector<16x8xf32>, vector<8x16xf32> -> vector<8x16xf32>
    %cst_23 = arith.constant dense<0xFF800000> : vector<16xf32>
    %25 = vector.multi_reduction <maximumf>, %24, %cst_23 [0] : vector<8x16xf32> to vector<16xf32>
    %26 = vector.shape_cast %25 : vector<16xf32> to vector<1x16xf32>
    %27 = vector.broadcast %26 : vector<1x16xf32> to vector<8x16xf32>
    %28 = arith.subf %24, %27 : vector<8x16xf32>
    %29 = math.exp %28 : vector<8x16xf32>
    %cst_24 = arith.constant dense<0.000000e+00> : vector<16xf32>
    %30 = vector.multi_reduction <add>, %29, %cst_24 [0] : vector<8x16xf32> to vector<16xf32>
    %31 = vector.shape_cast %30 : vector<16xf32> to vector<1x16xf32>
    %32 = tpu.reciprocal %31 {approx = true} : vector<1x16xf32> -> vector<1x16xf32>
    %33 = vector.broadcast %32 : vector<1x16xf32> to vector<8x16xf32>
    %34 = arith.mulf %29, %33 : vector<8x16xf32>
    %cst_25 = arith.constant dense<0.000000e+00> : vector<8xf32>
    %35 = vector.multi_reduction <add>, %34, %cst_25 [1] : vector<8x16xf32> to vector<8xf32>
    %36 = vector.shape_cast %35 : vector<8xf32> to vector<8x1xf32>
    %37 = tpu.reciprocal %36 {approx = true} : vector<8x1xf32> -> vector<8x1xf32>
    %38 = vector.broadcast %37 : vector<8x1xf32> to vector<8x16xf32>
    %39 = arith.mulf %34, %38 : vector<8x16xf32>
    %cst_26 = arith.constant dense<0.000000e+00> : vector<8x8xf32>
    %40 = tpu.matmul %39, %23, %cst_26 {dimension_numbers = #tpu.dot_dimension_numbers<[1], [0], [0], [1], [0, 0, 1, 1], [], []>} : vector<8x16xf32>, vector<16x8xf32>, vector<8x8xf32> -> vector<8x8xf32>
    %c0_27 = arith.constant 0 : index
    %c0_28 = arith.constant 0 : index
    %41 = vector.load %arg10[%c0_27, %c0_28] : memref<32x32xf32, #tpu.memory_space<vmem>>, vector<8x32xf32>
    %cst_29 = arith.constant dense<0.000000e+00> : vector<8x32xf32>
    %42 = tpu.matmul %40, %41, %cst_29 {dimension_numbers = #tpu.dot_dimension_numbers<[1], [0], [0], [1], [0, 0, 1, 1], [], []>} : vector<8x8xf32>, vector<8x32xf32>, vector<8x32xf32> -> vector<8x32xf32>
    %43 = vector.extract_strided_slice %10 {offsets = [0, 8], sizes = [8, 8], strides = [1, 1]} : vector<8x32xf32> to vector<8x8xf32>
    %44 = vector.extract_strided_slice %15 {offsets = [0, 8], sizes = [16, 8], strides = [1, 1]} : vector<16x32xf32> to vector<16x8xf32>
    %45 = vector.extract_strided_slice %20 {offsets = [0, 8], sizes = [16, 8], strides = [1, 1]} : vector<16x32xf32> to vector<16x8xf32>
    %cst_30 = arith.constant dense<0.000000e+00> : vector<8x16xf32>
    %46 = tpu.matmul %43, %44, %cst_30 {dimension_numbers = #tpu.dot_dimension_numbers<[1], [1], [0], [0], [0, 0, 1, 0], [], []>} : vector<8x8xf32>, vector<16x8xf32>, vector<8x16xf32> -> vector<8x16xf32>
    %cst_31 = arith.constant dense<0xFF800000> : vector<16xf32>
    %47 = vector.multi_reduction <maximumf>, %46, %cst_31 [0] : vector<8x16xf32> to vector<16xf32>
    %48 = vector.shape_cast %47 : vector<16xf32> to vector<1x16xf32>
    %49 = vector.broadcast %48 : vector<1x16xf32> to vector<8x16xf32>
    %50 = arith.subf %46, %49 : vector<8x16xf32>
    %51 = math.exp %50 : vector<8x16xf32>
    %cst_32 = arith.constant dense<0.000000e+00> : vector<16xf32>
    %52 = vector.multi_reduction <add>, %51, %cst_32 [0] : vector<8x16xf32> to vector<16xf32>
    %53 = vector.shape_cast %52 : vector<16xf32> to vector<1x16xf32>
    %54 = tpu.reciprocal %53 {approx = true} : vector<1x16xf32> -> vector<1x16xf32>
    %55 = vector.broadcast %54 : vector<1x16xf32> to vector<8x16xf32>
    %56 = arith.mulf %51, %55 : vector<8x16xf32>
    %cst_33 = arith.constant dense<0.000000e+00> : vector<8xf32>
    %57 = vector.multi_reduction <add>, %56, %cst_33 [1] : vector<8x16xf32> to vector<8xf32>
    %58 = vector.shape_cast %57 : vector<8xf32> to vector<8x1xf32>
    %59 = tpu.reciprocal %58 {approx = true} : vector<8x1xf32> -> vector<8x1xf32>
    %60 = vector.broadcast %59 : vector<8x1xf32> to vector<8x16xf32>
    %61 = arith.mulf %56, %60 : vector<8x16xf32>
    %cst_34 = arith.constant dense<0.000000e+00> : vector<8x8xf32>
    %62 = tpu.matmul %61, %45, %cst_34 {dimension_numbers = #tpu.dot_dimension_numbers<[1], [0], [0], [1], [0, 0, 1, 1], [], []>} : vector<8x16xf32>, vector<16x8xf32>, vector<8x8xf32> -> vector<8x8xf32>
    %c8 = arith.constant 8 : index
    %c0_35 = arith.constant 0 : index
    %63 = vector.load %arg10[%c8, %c0_35] : memref<32x32xf32, #tpu.memory_space<vmem>>, vector<8x32xf32>
    %cst_36 = arith.constant dense<0.000000e+00> : vector<8x32xf32>
    %64 = tpu.matmul %62, %63, %cst_36 {dimension_numbers = #tpu.dot_dimension_numbers<[1], [0], [0], [1], [0, 0, 1, 1], [], []>} : vector<8x8xf32>, vector<8x32xf32>, vector<8x32xf32> -> vector<8x32xf32>
    %65 = arith.addf %42, %64 : vector<8x32xf32>
    %66 = vector.extract_strided_slice %10 {offsets = [0, 16], sizes = [8, 8], strides = [1, 1]} : vector<8x32xf32> to vector<8x8xf32>
    %67 = vector.extract_strided_slice %15 {offsets = [0, 16], sizes = [16, 8], strides = [1, 1]} : vector<16x32xf32> to vector<16x8xf32>
    %68 = vector.extract_strided_slice %20 {offsets = [0, 16], sizes = [16, 8], strides = [1, 1]} : vector<16x32xf32> to vector<16x8xf32>
    %cst_37 = arith.constant dense<0.000000e+00> : vector<8x16xf32>
    %69 = tpu.matmul %66, %67, %cst_37 {dimension_numbers = #tpu.dot_dimension_numbers<[1], [1], [0], [0], [0, 0, 1, 0], [], []>} : vector<8x8xf32>, vector<16x8xf32>, vector<8x16xf32> -> vector<8x16xf32>
    %cst_38 = arith.constant dense<0xFF800000> : vector<16xf32>
    %70 = vector.multi_reduction <maximumf>, %69, %cst_38 [0] : vector<8x16xf32> to vector<16xf32>
    %71 = vector.shape_cast %70 : vector<16xf32> to vector<1x16xf32>
    %72 = vector.broadcast %71 : vector<1x16xf32> to vector<8x16xf32>
    %73 = arith.subf %69, %72 : vector<8x16xf32>
    %74 = math.exp %73 : vector<8x16xf32>
    %cst_39 = arith.constant dense<0.000000e+00> : vector<16xf32>
    %75 = vector.multi_reduction <add>, %74, %cst_39 [0] : vector<8x16xf32> to vector<16xf32>
    %76 = vector.shape_cast %75 : vector<16xf32> to vector<1x16xf32>
    %77 = tpu.reciprocal %76 {approx = true} : vector<1x16xf32> -> vector<1x16xf32>
    %78 = vector.broadcast %77 : vector<1x16xf32> to vector<8x16xf32>
    %79 = arith.mulf %74, %78 : vector<8x16xf32>
    %cst_40 = arith.constant dense<0.000000e+00> : vector<8xf32>
    %80 = vector.multi_reduction <add>, %79, %cst_40 [1] : vector<8x16xf32> to vector<8xf32>
    %81 = vector.shape_cast %80 : vector<8xf32> to vector<8x1xf32>
    %82 = tpu.reciprocal %81 {approx = true} : vector<8x1xf32> -> vector<8x1xf32>
    %83 = vector.broadcast %82 : vector<8x1xf32> to vector<8x16xf32>
    %84 = arith.mulf %79, %83 : vector<8x16xf32>
    %cst_41 = arith.constant dense<0.000000e+00> : vector<8x8xf32>
    %85 = tpu.matmul %84, %68, %cst_41 {dimension_numbers = #tpu.dot_dimension_numbers<[1], [0], [0], [1], [0, 0, 1, 1], [], []>} : vector<8x16xf32>, vector<16x8xf32>, vector<8x8xf32> -> vector<8x8xf32>
    %c16 = arith.constant 16 : index
    %c0_42 = arith.constant 0 : index
    %86 = vector.load %arg10[%c16, %c0_42] : memref<32x32xf32, #tpu.memory_space<vmem>>, vector<8x32xf32>
    %cst_43 = arith.constant dense<0.000000e+00> : vector<8x32xf32>
    %87 = tpu.matmul %85, %86, %cst_43 {dimension_numbers = #tpu.dot_dimension_numbers<[1], [0], [0], [1], [0, 0, 1, 1], [], []>} : vector<8x8xf32>, vector<8x32xf32>, vector<8x32xf32> -> vector<8x32xf32>
    %88 = arith.addf %65, %87 : vector<8x32xf32>
    %89 = vector.extract_strided_slice %10 {offsets = [0, 24], sizes = [8, 8], strides = [1, 1]} : vector<8x32xf32> to vector<8x8xf32>
    %90 = vector.extract_strided_slice %15 {offsets = [0, 24], sizes = [16, 8], strides = [1, 1]} : vector<16x32xf32> to vector<16x8xf32>
    %91 = vector.extract_strided_slice %20 {offsets = [0, 24], sizes = [16, 8], strides = [1, 1]} : vector<16x32xf32> to vector<16x8xf32>
    %cst_44 = arith.constant dense<0.000000e+00> : vector<8x16xf32>
    %92 = tpu.matmul %89, %90, %cst_44 {dimension_numbers = #tpu.dot_dimension_numbers<[1], [1], [0], [0], [0, 0, 1, 0], [], []>} : vector<8x8xf32>, vector<16x8xf32>, vector<8x16xf32> -> vector<8x16xf32>
    %cst_45 = arith.constant dense<0xFF800000> : vector<16xf32>
    %93 = vector.multi_reduction <maximumf>, %92, %cst_45 [0] : vector<8x16xf32> to vector<16xf32>
    %94 = vector.shape_cast %93 : vector<16xf32> to vector<1x16xf32>
    %95 = vector.broadcast %94 : vector<1x16xf32> to vector<8x16xf32>
    %96 = arith.subf %92, %95 : vector<8x16xf32>
    %97 = math.exp %96 : vector<8x16xf32>
    %cst_46 = arith.constant dense<0.000000e+00> : vector<16xf32>
    %98 = vector.multi_reduction <add>, %97, %cst_46 [0] : vector<8x16xf32> to vector<16xf32>
    %99 = vector.shape_cast %98 : vector<16xf32> to vector<1x16xf32>
    %100 = tpu.reciprocal %99 {approx = true} : vector<1x16xf32> -> vector<1x16xf32>
    %101 = vector.broadcast %100 : vector<1x16xf32> to vector<8x16xf32>
    %102 = arith.mulf %97, %101 : vector<8x16xf32>
    %cst_47 = arith.constant dense<0.000000e+00> : vector<8xf32>
    %103 = vector.multi_reduction <add>, %102, %cst_47 [1] : vector<8x16xf32> to vector<8xf32>
    %104 = vector.shape_cast %103 : vector<8xf32> to vector<8x1xf32>
    %105 = tpu.reciprocal %104 {approx = true} : vector<8x1xf32> -> vector<8x1xf32>
    %106 = vector.broadcast %105 : vector<8x1xf32> to vector<8x16xf32>
    %107 = arith.mulf %102, %106 : vector<8x16xf32>
    %cst_48 = arith.constant dense<0.000000e+00> : vector<8x8xf32>
    %108 = tpu.matmul %107, %91, %cst_48 {dimension_numbers = #tpu.dot_dimension_numbers<[1], [0], [0], [1], [0, 0, 1, 1], [], []>} : vector<8x16xf32>, vector<16x8xf32>, vector<8x8xf32> -> vector<8x8xf32>
    %c24 = arith.constant 24 : index
    %c0_49 = arith.constant 0 : index
    %109 = vector.load %arg10[%c24, %c0_49] : memref<32x32xf32, #tpu.memory_space<vmem>>, vector<8x32xf32>
    %cst_50 = arith.constant dense<0.000000e+00> : vector<8x32xf32>
    %110 = tpu.matmul %108, %109, %cst_50 {dimension_numbers = #tpu.dot_dimension_numbers<[1], [0], [0], [1], [0, 0, 1, 1], [], []>} : vector<8x8xf32>, vector<8x32xf32>, vector<8x32xf32> -> vector<8x32xf32>
    %111 = arith.addf %88, %110 : vector<8x32xf32>
    %c0_51 = arith.constant 0 : index
    %c0_52 = arith.constant 0 : index
    %112 = vector.load %arg11[%c0_51, %c0_52] : memref<1x32xf32, #tpu.memory_space<vmem>>, vector<1x32xf32>
    %113 = vector.broadcast %112 : vector<1x32xf32> to vector<8x32xf32>
    %114 = arith.addf %111, %113 : vector<8x32xf32>
    %c0_53 = arith.constant 0 : index
    %c0_54 = arith.constant 0 : index
    %c0_55 = arith.constant 0 : index
    %115 = vector.load %arg12[%c0_53, %c0_54, %c0_55] : memref<1x8x32xf32, #tpu.memory_space<vmem>>, vector<1x8x32xf32>
    %116 = vector.shape_cast %115 : vector<1x8x32xf32> to vector<8x32xf32>
    %117 = vector.shape_cast %114 : vector<8x32xf32> to vector<1x8x32xf32>
    tpu.vector_store %arg12[%c0_53, %c0_54, %c0_55], %117 {strides = array<i32>} : memref<1x8x32xf32, #tpu.memory_space<vmem>>, vector<1x8x32xf32>,
    return
  }
  func.func @transform_0(%arg0: i32) -> (i32, i32, i32) {
    %c0_i32 = arith.constant 0 : i32
    %c0_i32_0 = arith.constant 0 : i32
    %c0_i32_1 = arith.constant 0 : i32
    return %arg0, %c0_i32, %c0_i32_0 : i32, i32, i32
  }
  func.func @transform_1(%arg0: i32) -> (i32, i32, i32) {
    %c0_i32 = arith.constant 0 : i32
    %c0_i32_0 = arith.constant 0 : i32
    %c0_i32_1 = arith.constant 0 : i32
    return %arg0, %c0_i32, %c0_i32_0 : i32, i32, i32
  }
  func.func @transform_2(%arg0: i32) -> (i32, i32, i32) {
    %c0_i32 = arith.constant 0 : i32
    %c0_i32_0 = arith.constant 0 : i32
    %c0_i32_1 = arith.constant 0 : i32
    return %arg0, %c0_i32, %c0_i32_0 : i32, i32, i32
  }
  func.func @transform_3(%arg0: i32) -> (i32, i32) {
    %c0_i32 = arith.constant 0 : i32
    %c0_i32_0 = arith.constant 0 : i32
    %c0_i32_1 = arith.constant 0 : i32
    return %c0_i32, %c0_i32_0 : i32, i32
  }
  func.func @transform_4(%arg0: i32) -> (i32, i32) {
    %c0_i32 = arith.constant 0 : i32
    %c0_i32_0 = arith.constant 0 : i32
    %c0_i32_1 = arith.constant 0 : i32
    return %c0_i32, %c0_i32_0 : i32, i32
  }
  func.func @transform_5(%arg0: i32) -> (i32, i32) {
    %c0_i32 = arith.constant 0 : i32
    %c0_i32_0 = arith.constant 0 : i32
    %c0_i32_1 = arith.constant 0 : i32
    return %c0_i32, %c0_i32_0 : i32, i32
  }
  func.func @transform_6(%arg0: i32) -> (i32, i32) {
    %c0_i32 = arith.constant 0 : i32
    %c0_i32_0 = arith.constant 0 : i32
    %c0_i32_1 = arith.constant 0 : i32
    return %c0_i32, %c0_i32_0 : i32, i32
  }
  func.func @transform_7(%arg0: i32) -> (i32, i32) {
    %c0_i32 = arith.constant 0 : i32
    %c0_i32_0 = arith.constant 0 : i32
    %c0_i32_1 = arith.constant 0 : i32
    return %c0_i32, %c0_i32_0 : i32, i32
  }
  func.func @transform_8(%arg0: i32) -> (i32, i32) {
    %c0_i32 = arith.constant 0 : i32
    %c0_i32_0 = arith.constant 0 : i32
    %c0_i32_1 = arith.constant 0 : i32
    return %c0_i32, %c0_i32_0 : i32, i32
  }
  func.func @transform_9(%arg0: i32) -> (i32, i32) {
    %c0_i32 = arith.constant 0 : i32
    %c0_i32_0 = arith.constant 0 : i32
    %c0_i32_1 = arith.constant 0 : i32
    return %c0_i32, %c0_i32_0 : i32, i32
  }
  func.func @transform_10(%arg0: i32) -> (i32, i32) {
    %c0_i32 = arith.constant 0 : i32
    %c0_i32_0 = arith.constant 0 : i32
    %c0_i32_1 = arith.constant 0 : i32
    return %c0_i32, %c0_i32_0 : i32, i32
  }
  func.func @transform_11(%arg0: i32) -> (i32, i32, i32) {
    %c0_i32 = arith.constant 0 : i32
    %c0_i32_0 = arith.constant 0 : i32
    %c0_i32_1 = arith.constant 0 : i32
    return %arg0, %c0_i32, %c0_i32_0 : i32, i32, i32
  }
}

</mosaic_0001>

<bundles_post_ra>
// kernel: tpu_custom_call.1
= control target key start
LH: loop header
LB: loop body
LE: loop exit
PB: predicated region body
PF: predicated region fallthrough
CT: control target
= control target key end

     0   :  { %s3296_s0 = inlined_call_operand.hbm [shape: f32[2,8,32], index: 0, kind: input, shape index: {}]   ;;  %s3297_s1 = inlined_call_operand.hbm [shape: f32[2,16,32], index: 1, kind: input, shape index: {}]   ;;  %s3298_s2 = inlined_call_operand.hbm [shape: f32[2,16,32], index: 2, kind: input, shape index: {}]   ;;  %s3299_s3 = inlined_call_operand.hbm [shape: f32[32,32], index: 3, kind: input, shape index: {}]   ;;  %s3300_s4 = inlined_call_operand.hbm [shape: f32[32,32], index: 4, kind: input, shape index: {}]   ;;  %s3301_s5 = inlined_call_operand.hbm [shape: f32[32,32], index: 5, kind: input, shape index: {}]   ;;  %s3302_s6 = inlined_call_operand.vmem [shape: f32[1,32], index: 6, kind: input, shape index: {}]   ;;  %s3303_s7 = inlined_call_operand.vmem [shape: f32[1,32], index: 7, kind: input, shape index: {}]   ;;  %s3304_s8 = inlined_call_operand.hbm [shape: f32[1,32], index: 8, kind: input, shape index: {}]   ;;  %s3305_s9 = inlined_call_operand.vmem [shape: f32[32,32], index: 9, kind: input, shape index: {}]   ;;  %s3306_s10 = inlined_call_operand.vmem [shape: f32[1,32], index: 10, kind: input, shape index: {}]   ;;  %s3307_s11 = inlined_call_operand.hbm [shape: f32[2,8,32], index: 11, kind: output, shape index: {}]  }
   0x1   :  { %3334 = sst [smem:[#allocation26_spill]] %s3297_s1 }
   0x2   :  { %3335 = sst [smem:[#allocation27_spill]] %s3299_s3 }
   0x3   :  { %3336 = sst [smem:[#allocation28_spill]] %s3301_s5 }
   0x4   :  { %3337 = sst [smem:[#allocation29_spill]] %s3302_s6 }
   0x5   :  { %3338 = sst [smem:[#allocation30_spill]] %s3303_s7 }
   0x6   :  { %3339 = sst [smem:[#allocation31_spill]] %s3305_s9 }
   0x7   :  { %3340 = sst [smem:[#allocation32_spill]] %s3306_s10 }
   0x8   :  { %3341 = sst [smem:[#allocation33_spill]] %s3307_s11 }
   0x9   :  { %16 = vsyncpa [#allocation3], 0 }
   0xa   :  { %18 = vsyncpa [#allocation3 + $0x1], 0 }
   0xb   :  { %19 = vsyncpa [#allocation6], 0 }
   0xc   :  { %21 = vsyncpa [#allocation6 + $0x1], 0 }
   0xd   :  { %22 = vsyncpa [#allocation9], 0 }
   0xe   :  { %23 = vsyncpa [#allocation12], 0 }
   0xf   :  { %24 = vsyncpa [#allocation4], 0 }
  0x10   :  { %26 = vsyncpa [#allocation4 + $0x1], 0  ;;  %s2800_s17 = smov 0   ;;  %s2802_s18 = smov 0  }
  0x11   :  { %s2804_s19 = smov 0   ;;  %s2806_s20 = smov 0  }
  0x12 LB: > { %3342 = sst [smem:[#allocation20_spill]] %s2710_s17  ;;  %s2821_s21 = sadd.s32 4294967295, %s2722_s20   ;;  %s2722_s20 = sphi %s2806_s20, %s3386_s20   ;;  %s2718_s19 = sphi %s2804_s19, %s3388_s19   ;;  %s2714_s18 = sphi %s2802_s18, %s3390_s18   ;;  %s2710_s17 = sphi %s2800_s17, %s3389_s17  }
  0x13   : > { %3343 = sst [smem:[#allocation21_spill]] %s2718_s19  ;;  %s2016_s22 = sadd.s32 4294967294, %s2722_s20  }
  0x14   : > { %p52_p0 = scmp.ne.s32.totalorder %s2714_s18, %s2710_s17  ;;  %p3308_p1 = scmp.eq.s32.totalorder %s2821_s21, 0 }
  0x15   : > { %p302_p3 = scmp.eq.s32.totalorder %s2016_s22, 1  ;;  %p2017_p5 = scmp.ge.s32.totalorder %s2722_s20, 1 }
  0x16   : > { %p2830_p4 = por %p3308_p1, %p52_p0  ;;  %p309_p7 = scmp.lt.s32.totalorder %s2722_s20, 3 }
  0x17   : > { %p2835_p6 = por %p302_p3, %p52_p0  ;;  %s2724_s26 = smov [#allocation8]  }
  0x18   : > { %s3344_s23 = scalar_select %p2830_p4, 1, 0 }
  0x19   : > { %s3345_s24 = scalar_select %p2835_p6, 1, 0 }
  0x1a   : > { %p2840_p8 = pnand %p2017_p5, %p309_p7  ;;  %s321_s27 = sshll.u32 %s2724_s26, 4  ;;  %s2844_s27 = int_to_ptr.vmem [resolvable:$true] %s321_s27 }
  0x1b   : > { %3346 = sst [smem:[#allocation22_spill]] %s3345_s24  ;;  %s2725_s29 = smov [#allocation11]  }
  0x1c   : > { %s3347_s25 = scalar_select %p2840_p8, 1, 0 }
  0x1d   : > { %p2307_p9 = pneg %p2840_p8  ;;  %s347_s30 = sshll.u32 %s2725_s29, 4  ;;  %s2855_s30 = int_to_ptr.vmem [resolvable:$true] %s347_s30 }
  0x1e   : > { %s3349_s3 = sld [smem:[#allocation27_spill]] }
  0x1f   : > { %p2851_p11 = pnand %p2307_p9, %p3308_p1 }
  0x21   : > { %s3348_s28 = scalar_select %p2851_p11, 1, 0 }
  0x22   : > { %p2865_p13 = pneg %p2851_p11 }
  0x24   : > { %s2442_s14 = scalar_lea.hbm %s3349_s3, 512 }
  0x25   : > { %p2443_p12 = scmp.ne.s32.totalorder %s3349_s3, %s2442_s14  ;;  %p2449_p5 = scmp.lt.u32.totalorder %s2442_s14, %s3349_s3 }
  0x26   : > { %s3350_s22 = scalar_select %p2865_p13, 1, 0 }
  0x27   : > { %p2445_p0 = pnand %p2865_p13, %p2443_p12 }
  0x29   : > { %p2446_p3 = pneg %p2445_p0 }
  0x2b   : > { %p2451_p7 = pnand %p2449_p5, %p2446_p3 }
  0x2d   : > { %2454 = shalt.err (!%p2451_p7)
}
  0x2e   : > { %s2455_s12 = scalar_lea.vmem %s2844_s27, 512  ;;  %p2463_p2 = scmp.lt.s32.totalorder %s2844_s27, %s2844_s27 }
  0x2f   : > { %p2456_p9 = scmp.ne.s32.totalorder %s2844_s27, %s2455_s12  ;;  %p2464_p6 = scmp.lt.s32.totalorder %s2455_s12, %s2455_s12 }
  0x31   : > { %p2458_p10 = pnand %p2456_p9, %p2865_p13  ;;  %p2465_p12 = por %p2464_p6, %p2463_p2 }
  0x33   : > { %p2459_p1 = pneg %p2458_p10 }
  0x35   : > { %p2466_p0 = pnand %p2465_p12, %p2459_p1 }
  0x37   : > { %2469 = shalt.err (!%p2466_p0)
}
  0x38   : > { %s3312_s13 = smov 128   ;;  %s3314_s14 = smov 8  }
  0x39   : > { %2310 = dma.hbm_to_vmem [thread:$0]  (!%p2851_p11), %s3349_s3, 512, %s2844_s27, [#allocation9], %s3312_s13, %s3312_s13, %s3314_s14  }
  0x3a   : > { %s3351_s5 = sld [smem:[#allocation28_spill]] }
  0x40   : > { %s2470_s12 = scalar_lea.hbm %s3351_s5, 512 }
  0x41   : > { %p2471_p1 = scmp.ne.s32.totalorder %s3351_s5, %s2470_s12  ;;  %p2477_p10 = scmp.lt.u32.totalorder %s2470_s12, %s3351_s5 }
  0x43   : > { %p2473_p2 = pnand %p2471_p1, %p2865_p13 }
  0x45   : > { %p2474_p6 = pneg %p2473_p2 }
  0x47   : > { %p2479_p3 = pnand %p2477_p10, %p2474_p6 }
  0x49   : > { %2482 = shalt.err (!%p2479_p3)
}
  0x4a   : > { %s2483_s27 = scalar_lea.vmem %s2855_s30, 512  ;;  %p2491_p12 = scmp.lt.s32.totalorder %s2855_s30, %s2855_s30 }
  0x4b   : > { %p2484_p5 = scmp.ne.s32.totalorder %s2855_s30, %s2483_s27  ;;  %p2492_p0 = scmp.lt.s32.totalorder %s2483_s27, %s2483_s27 }
  0x4d   : > { %p2486_p7 = pnand %p2484_p5, %p2865_p13  ;;  %p2493_p1 = por %p2492_p0, %p2491_p12 }
  0x4f   : > { %p2487_p9 = pneg %p2486_p7 }
  0x51   : > { %p2494_p2 = pnand %p2493_p1, %p2487_p9 }
  0x53   : > { %2497 = shalt.err (!%p2494_p2)
}
  0x54   : > { %2316 = dma.hbm_to_vmem [thread:$0]  (!%p2851_p11), %s3351_s5, 512, %s2855_s30, [#allocation12], %s3312_s13, %s3312_s13, %s3314_s14  }
  0x55   : > { %s2916_s17 = sadd.s32 1, %s2722_s20   ;;  %s39_s24 = sadd.s32 1, %s2718_s19 }
  0x56   : > { %3352 = sst [smem:[#allocation23_spill]] %s2916_s17  ;;  %s36_s15 = ssub.s32 %s2722_s20, %s2916_s17 }
  0x57   : > { %p46_p6 = scmp.ne.s32.totalorder %s2718_s19, %s2714_s18  ;;  %p37_p10 = scmp.eq.s32.totalorder %s36_s15, 0 }
  0x58   : > { %p47_p3 = scmp.eq.s32.totalorder %s2722_s20, 0  ;;  %p3353_p5 = scmp.eq.s32.totalorder %s2821_s21, 1 }
  0x59   : > { %p2338_p9 = scmp.lt.s32.totalorder %s2722_s20, 2  ;;  %s2935_s29 = sand.u32 1, %s2718_s19  }
  0x5a   : > { %p2926_p7 = por %p3353_p5, %p46_p6  ;;  %p48_p12 = por %p47_p3, %p46_p6 }
  0x5b   : > { %s2932_s26 = scalar_select %p37_p10, %s2718_s19, %s39_s24  }
  0x5c   : > { %s3354_s16 = scalar_select %p2926_p7, 1, 0 }
  0x5d   : > { %3356 = sst [smem:[#allocation25_spill]] %s2932_s26  ;;  %s402_s30 = sand.u32 1, %s2722_s20  }
  0x5e   : > { %3355 = sst [smem:[#allocation24_spill]] %s3354_s16  ;;  %s3319_s12 = sshll.u32 %s2935_s29, 4 }
  0x5f   : > { %p2939_p0 = pnand %p2338_p9, %p48_p12  ;;  %s2073_s10 = sshll.u32 %s2722_s20, 8 }
  0x60   : > { %s3358_s1 = sld [smem:[#allocation26_spill]]  ;;  %s406_s24 = scalar_lea.vmem [#allocation5], %s3319_s12 }
  0x61   : > { %s3357_s27 = scalar_select %p2939_p0, 1, 0 }
  0x62   : > { %s413_s14 = sshll.u32 %s406_s24, 4  ;;  %s2956_s26 = scalar_lea.hbm %s3298_s2, %s2073_s10  ;;  %s2951_s14 = int_to_ptr.vmem [resolvable:$true] %s413_s14 }
  0x63   : > { %s2958_s19 = scalar_lea.sflag [#allocation6], %s402_s30  ;;  %p2964_p2 = pneg %p2939_p0 }
  0x65   : > { %s3359_s11 = scalar_select %p2964_p2, 1, 0 }
  0x66   : > { %s2947_s13 = scalar_lea.hbm %s3358_s1, %s2073_s10  ;;  %s2503_s12 = scalar_lea.hbm %s3358_s1, 512 }
  0x67   : > { %s2498_s17 = scalar_lea.hbm %s2947_s13, 256  ;;  %p2504_p3 = scmp.lt.u32.totalorder %s2947_s13, %s3358_s1 }
  0x68   : > { %p2499_p1 = scmp.ne.s32.totalorder %s2947_s13, %s2498_s17  ;;  %p2505_p5 = scmp.lt.u32.totalorder %s2503_s12, %s2498_s17 }
  0x69   : > { %p2507_p12 = scmp.lt.u32.totalorder %s2498_s17, %s2947_s13 }
  0x6a   : > { %p2501_p6 = pnand %p2964_p2, %p2499_p1  ;;  %p2506_p9 = por %p2505_p5, %p2504_p3 }
  0x6c   : > { %p2502_p10 = pneg %p2501_p6  ;;  %p2508_p7 = por %p2507_p12, %p2506_p9 }
  0x6e   : > { %p2509_p4 = pnand %p2508_p7, %p2502_p10 }
  0x70   : > { %2512 = shalt.err (!%p2509_p4)
}
  0x71   : > { %s2513_s30 = scalar_lea.vmem %s2951_s14, 256  ;;  %s2728_s10 = smov [#allocation5]  }
  0x72   : > { %p2514_p1 = scmp.ne.s32.totalorder %s2951_s14, %s2513_s30  ;;  %s2518_s15 = sshll.u32 %s2728_s10, 4  ;;  %s2519_s15 = int_to_ptr.vmem [resolvable:$false] %s2518_s15 }
  0x73   : > { %s2520_s24 = scalar_lea.vmem %s2519_s15, 512  ;;  %p2521_p11 = scmp.lt.s32.totalorder %s2951_s14, %s2519_s15 }
  0x74   : > { %p2516_p6 = pnand %p2514_p1, %p2964_p2  ;;  %p2522_p13 = scmp.lt.s32.totalorder %s2520_s24, %s2513_s30 }
  0x76   : > { %p2517_p8 = pneg %p2516_p6  ;;  %p2523_p3 = por %p2522_p13, %p2521_p11 }
  0x78   : > { %p2524_p5 = pnand %p2523_p3, %p2517_p8 }
  0x7a   : > { %2527 = shalt.err (!%p2524_p5)
}
  0x7b   : > { %s3360_s17 = smov 8   ;;  %s3361_s12 = smov 128  }
  0x7c   : > { %2326 = dma.hbm_to_vmem [thread:$0]  (!%p2939_p0), %s2947_s13, 256, %s2951_s14, %s2958_s19, %s3361_s12, %s3361_s12, %s3360_s17  }
  0x7d   : > { %s3362_s3 = sshll.u32 %s2935_s29, 4  ;;  %s2729_s30 = smov [#allocation10]  }
  0x7e   : > { %s427_s5 = scalar_lea.vmem [#allocation7], %s3362_s3  ;;  %s334_s15 = sshll.u32 %s2729_s30, 4  ;;  %s335_s15 = int_to_ptr.vmem [resolvable:$true] %s334_s15 }
  0x7f   : > { %s434_s10 = sshll.u32 %s427_s5, 4  ;;  %s2528_s16 = scalar_lea.hbm %s3300_s4, 512  ;;  %s2993_s10 = int_to_ptr.vmem [resolvable:$true] %s434_s10 }
  0x80   : > { %p2529_p4 = scmp.ne.s32.totalorder %s3300_s4, %s2528_s16  ;;  %p3363_p8 = scmp.ne.s32.totalorder %s3350_s22, 0 }
  0x81   : > { %p2535_p7 = scmp.lt.u32.totalorder %s2528_s16, %s3300_s4 }
  0x82   : > { %p2531_p11 = pnand %p2529_p4, %p3363_p8 }
  0x84   : > { %p2532_p13 = pneg %p2531_p11 }
  0x86   : > { %p2537_p10 = pnand %p2535_p7, %p2532_p13 }
  0x88   : > { %2540 = shalt.err (!%p2537_p10)
}
  0x89   : > { %s2541_s3 = scalar_lea.vmem %s335_s15, 512  ;;  %p2549_p6 = scmp.lt.s32.totalorder %s335_s15, %s335_s15 }
  0x8a   : > { %p2542_p9 = scmp.ne.s32.totalorder %s335_s15, %s2541_s3  ;;  %p2550_p3 = scmp.lt.s32.totalorder %s2541_s3, %s2541_s3 }
  0x8c   : > { %p2544_p12 = pnand %p2542_p9, %p3363_p8  ;;  %p2551_p5 = por %p2550_p3, %p2549_p6 }
  0x8e   : > { %p2545_p1 = pneg %p2544_p12 }
  0x90   : > { %p2552_p0 = pnand %p2551_p5, %p2545_p1 }
  0x92   : > { %2555 = shalt.err (!%p2552_p0)
}
  0x93   : > { %p3364_p4 = scmp.ne.s32.totalorder %s3348_s28, 0  ;;  %s2730_s9 = smov [#allocation13]  }
  0x94   : > { %s367_s16 = sshll.u32 %s2730_s9, 4  ;;  %s2023_s5 = sshll.u32 %s2935_s29, 3  ;;  %s368_s16 = int_to_ptr.vmem [resolvable:$true] %s367_s16 }
  0x95   : > { %2313 = dma.hbm_to_vmem [thread:$0]  (!%p3364_p4), %s3300_s4, 512, %s335_s15, [#allocation9], %s3361_s12, %s3361_s12, %s3360_s17  }
  0x96   : > { %s2556_s13 = scalar_lea.hbm %s3304_s8, 16 }
  0x97   : > { %p2557_p0 = scmp.ne.s32.totalorder %s3304_s8, %s2556_s13  ;;  %p2563_p7 = scmp.lt.u32.totalorder %s2556_s13, %s3304_s8 }
  0x99   : > { %p2559_p11 = pnand %p2557_p0, %p3363_p8 }
  0x9b   : > { %p2560_p13 = pneg %p2559_p11 }
  0x9d   : > { %p2565_p10 = pnand %p2563_p7, %p2560_p13 }
  0x9f   : > { %2568 = shalt.err (!%p2565_p10)
}
  0xa0   : > { %s2569_s15 = scalar_lea.vmem %s368_s16, 16  ;;  %s2576_s6 = scalar_lea.vmem %s368_s16, 32 }
  0xa1   : > { %p2570_p9 = scmp.ne.s32.totalorder %s368_s16, %s2569_s15  ;;  %p2577_p6 = scmp.lt.s32.totalorder %s368_s16, %s368_s16 }
  0xa2   : > { %p2578_p3 = scmp.lt.s32.totalorder %s2576_s6, %s2569_s15 }
  0xa3   : > { %p2572_p12 = pnand %p2570_p9, %p3363_p8 }
  0xa4   : > { %p2579_p5 = por %p2578_p3, %p2577_p6 }
  0xa5   : > { %p2573_p1 = pneg %p2572_p12 }
  0xa7   : > { %p2580_p2 = pnand %p2579_p5, %p2573_p1 }
  0xa9   : > { %2583 = shalt.err (!%p2580_p2)
}
  0xaa   : > { %2319 = dma.hbm_to_vmem [thread:$0]  (!%p3364_p4), %s3304_s8, 16, %s368_s16, [#allocation12]  }
  0xab   : > { %s2024_s7 = sshll.u32 %s2722_s20, 7  ;;  %s388_s14 = scalar_lea.vmem [#allocation2], %s2023_s5 }
  0xac   : > { %s3039_s13 = scalar_lea.hbm %s3296_s0, %s2024_s7  ;;  %s395_s3 = sshll.u32 %s388_s14, 4  ;;  %s396_s3 = int_to_ptr.vmem [resolvable:$true] %s395_s3 }
  0xad   : > { %s385_s28 = scalar_lea.sflag [#allocation3], %s2935_s29  ;;  %s2584_s1 = scalar_lea.hbm %s3039_s13, 128 }
  0xae   : > { %p2585_p2 = scmp.ne.s32.totalorder %s3039_s13, %s2584_s1  ;;  %p3365_p8 = scmp.ne.s32.totalorder %s3359_s11, 0 }
  0xaf   : > { %s2589_s6 = scalar_lea.hbm %s3296_s0, 256  ;;  %p2590_p4 = scmp.lt.u32.totalorder %s3039_s13, %s3296_s0 }
  0xb0   : > { %p2587_p0 = pnand %p2585_p2, %p3365_p8  ;;  %p2591_p13 = scmp.lt.u32.totalorder %s2589_s6, %s2584_s1 }
  0xb1   : > { %p2593_p10 = scmp.lt.u32.totalorder %s2584_s1, %s3039_s13 }
  0xb2   : > { %p2588_p11 = pneg %p2587_p0  ;;  %p2592_p7 = por %p2591_p13, %p2590_p4 }
  0xb4   : > { %p2594_p9 = por %p2593_p10, %p2592_p7 }
  0xb6   : > { %p2595_p12 = pnand %p2594_p9, %p2588_p11 }
  0xb8   : > { %2598 = shalt.err (!%p2595_p12)
}
  0xb9   : > { %s2599_s29 = scalar_lea.vmem %s396_s3, 128  ;;  %s2731_s5 = smov [#allocation2]  }
  0xba   : > { %p2600_p1 = scmp.ne.s32.totalorder %s396_s3, %s2599_s29  ;;  %s2604_s7 = sshll.u32 %s2731_s5, 4  ;;  %s2605_s7 = int_to_ptr.vmem [resolvable:$false] %s2604_s7 }
  0xbb   : > { %s2606_s24 = scalar_lea.vmem %s2605_s7, 256  ;;  %p2607_p5 = scmp.lt.s32.totalorder %s396_s3, %s2605_s7 }
  0xbc   : > { %p2602_p6 = pnand %p2600_p1, %p3365_p8  ;;  %p2608_p2 = scmp.lt.s32.totalorder %s2606_s24, %s2599_s29 }
  0xbe   : > { %p2603_p3 = pneg %p2602_p6  ;;  %p2609_p0 = por %p2608_p2, %p2607_p5 }
  0xc0   : > { %p2610_p4 = pnand %p2609_p0, %p2603_p3 }
  0xc2   : > { %2613 = shalt.err (!%p2610_p4)
}
  0xc3   : > { %p3366_p13 = scmp.ne.s32.totalorder %s3357_s27, 0  ;;  %s2614_s22 = scalar_lea.hbm %s2956_s26, 256 }
  0xc4   : > { %p2615_p11 = scmp.ne.s32.totalorder %s2956_s26, %s2614_s22  ;;  %s2619_s16 = scalar_lea.hbm %s3298_s2, 512 }
  0xc5   : > { %2323 = dma.hbm_to_vmem [thread:$0]  (!%p3366_p13), %s3039_s13, 128, %s396_s3, %s385_s28  }
  0xc6   : > { %p2617_p7 = pnand %p2615_p11, %p3365_p8  ;;  %p2620_p9 = scmp.lt.u32.totalorder %s2956_s26, %s3298_s2 }
  0xc7   : > { %p2621_p12 = scmp.lt.u32.totalorder %s2619_s16, %s2614_s22  ;;  %p2623_p6 = scmp.lt.u32.totalorder %s2614_s22, %s2956_s26 }
  0xc8   : > { %p2618_p10 = pneg %p2617_p7 }
  0xc9   : > { %p2622_p1 = por %p2621_p12, %p2620_p9 }
  0xcb   : > { %p2624_p3 = por %p2623_p6, %p2622_p1 }
  0xcd   : > { %p2625_p5 = pnand %p2624_p3, %p2618_p10 }
  0xcf   : > { %2628 = shalt.err (!%p2625_p5)
}
  0xd0   : > { %s2629_s13 = scalar_lea.vmem %s2993_s10, 256  ;;  %s2732_s3 = smov [#allocation7]  }
  0xd1   : > { %p2630_p2 = scmp.ne.s32.totalorder %s2993_s10, %s2629_s13  ;;  %s2634_s28 = sshll.u32 %s2732_s3, 4  ;;  %s2635_s28 = int_to_ptr.vmem [resolvable:$false] %s2634_s28 }
  0xd2   : > { %s2636_s9 = scalar_lea.vmem %s2635_s28, 512  ;;  %p2637_p11 = scmp.lt.s32.totalorder %s2993_s10, %s2635_s28 }
  0xd3   : > { %p2632_p0 = pnand %p2630_p2, %p3365_p8  ;;  %p2638_p7 = scmp.lt.s32.totalorder %s2636_s9, %s2629_s13 }
  0xd5   : > { %p2633_p4 = pneg %p2632_p0  ;;  %p2639_p9 = por %p2638_p7, %p2637_p11 }
  0xd7   : > { %p2640_p12 = pnand %p2639_p9, %p2633_p4 }
  0xd9   : > { %2643 = shalt.err (!%p2640_p12)
}
  0xda   : > { %2329 = dma.hbm_to_vmem [thread:$0]  (!%p3366_p13), %s2956_s26, 256, %s2993_s10, %s2958_s19, %s3361_s12, %s3361_s12, %s3360_s17  }
  0xdb   : > { %p3367_p8 = scmp.ne.s32.totalorder %s3347_s25, 0 }
  0xdc   : > { %s3087_s11 = sand.u32 (!%p3367_p8), 1, %s2714_s18   ;;  %p3368_p10 = scmp.ne.s32.totalorder (!%p3367_p8), %s3344_s23, 0 }
  0xdd   : > { %446 = sbr.rel (%p3367_p8) target bundleno = 2316 (0x90c), region = 64  ;;  %s2032_s30 = sshll.u32 (!%p3367_p8), %s3087_s11, 3 }
  0xde   : > { %s449_s29 = scalar_lea.sflag (!%p3367_p8), [#allocation3], %s3087_s11  ;;  %s3093_s27 = scalar_lea.vmem (!%p3367_p8), [#allocation2], %s2032_s30 }
  0xe4   : > { %2689 = dma.done.wait (%p3368_p10), %s449_s29, 128  }
  0xe5   : > { %2691 = vsyncadd (%p3368_p10), %s449_s29, 4294967168  ;;  %s457_s19 = sand.u32 1, %s2821_s21   ;;  %s2033_s25 = sshll.u32 %s3087_s11, 4 }
  0xe6   : > { %s458_s26 = scalar_lea.sflag [#allocation6], %s457_s19  ;;  %s3101_s17 = scalar_lea.vmem [#allocation5], %s2033_s25 }
  0xe7   : > { %2693 = dma.done.wait (%p3368_p10), %s458_s26, 512  }
  0xe8   : > { %2695 = vsyncadd (%p3368_p10), %s458_s26, 4294966784  ;;  %s3107_s12 = scalar_lea.vmem [#allocation7], %s2033_s25  ;;  %p3369_p13 = scmp.eq.s32.totalorder %s2821_s21, 0 }
  0xea   : > { %2697 = dma.done.wait (%p3369_p13), [#allocation9], 1024   ;;  %p3370_p1 = pmov %p3369_p13 }
  0xec   : > { %2699 = vsyncadd (%p3370_p1), [#allocation9], 4294966272  ;;  %p3371_p6 = pmov %p3370_p1 }
  0xed   : > { %p3372_p3 = pmov %p3370_p1 }
  0xee   : > { %2701 = dma.done.wait (%p3371_p6), [#allocation12], 528  }
  0xef   : > { %2703 = vsyncadd (%p3372_p3), [#allocation12], 4294966768  ;;  %v2733_v0 = vmov 0.0|0.0   ;;  %vm2734_vm0 = vmmov 0   ;;  %v2735_v1 = vmov 0.0   ;;  %v625_v2 = vld [vmem:[#allocation10] sm:$0xff] }
  0xf0   : > { %2233 = vmatprep.subr.bf16.mxu0 %v2733_v0  ;;  %2132 = vmatprep.mubr.msk.f32.mxu0 %vm2734_vm0, %v2735_v1  ;;  %v626_v3 = vld [vmem:[#allocation10 + $0x8] sm:$0xff]  ;;  %v540_v4 = vld [vmem:[#allocation8] sm:$0xff]  ;;  %vm551_vm1 = vcmask 261120   ;;  %v627_v7 = vld [vmem:[#allocation10 + $0x10] sm:$0xff]  ;;  %s3373_s5 = sld [smem:[#allocation30_spill]]  ;;  %vm809_vm2 = vcmask 64512  }
  0xf1   : > { %v2239_v5 = vpack.c.bf16 %v626_v3, %v625_v2  ;;  %v541_v6 = vld [vmem:[#allocation8 + $0x8] sm:$0xff]  ;;  %v628_v8 = vld [vmem:[#allocation10 + $0x18] sm:$0xff]  ;;  %v542_v11 = vld [vmem:[#allocation8 + $0x10] sm:$0xff]  ;;  %s3374_s22 = sld [smem:[#allocation29_spill]]  ;;  %s2736_s14 = smov 120   ;;  %vm889_vm4 = vcmask 130048  }
  0xf2   : > { %v2234_v9 = vpack.c.bf16 %v541_v6, %v540_v4  ;;  %v2243_v10 = vpack.c.bf16 %v628_v8, %v627_v7  ;;  %v543_v12 = vld [vmem:[#allocation8 + $0x18] sm:$0xff]  ;;  %v536_v13 = vld [vmem:[%s3101_s17] sm:$0xff]  ;;  %v718_v15 = vld [vmem:[#allocation11 + $0x8] sm:$0xff]  ;;  %s2737_s1 = smov 112   ;;  %s2738_s16 = smov 104  }
  0xf3   : > { %2240 = vmatprep.subr.bf16.mxu1 %v2239_v5  ;;  %2143 = vmatprep.mubr.msk.f32.mxu1 %vm551_vm1, %v536_v13  ;;  %v717_v14 = vld [vmem:[#allocation11] sm:$0xff]  ;;  %v2237_v16 = vpack.c.bf16 %v543_v12, %v542_v11  ;;  %v719_v18 = vld [vmem:[#allocation11 + $0x10] sm:$0xff]  ;;  %v720_v19 = vld [vmem:[#allocation11 + $0x18] sm:$0xff]  ;;  %s3377_s13 = sld [smem:[#allocation31_spill]]  ;;  %s2070_s23 = sshll.u32 %s2821_s21, 7 }
  0xf4   : > { %2235 = vmatpush3.bf16.msra.mxu0 %v2234_v9  ;;  %2242 = vmatpush3.bf16.msra.mxu1 %v2239_v5  ;;  %v2247_v17 = vpack.c.bf16 %v718_v15, %v717_v14  ;;  %v537_v20 = vld [vmem:[%s3101_s17 + $0x8] sm:$0xff]  ;;  %v2251_v22 = vpack.c.bf16 %v720_v19, %v719_v18  ;;  %v538_v23 = vld [vmem:[%s3107_s12] sm:$0xff]  ;;  %vm3145_vm3 = vmpackc.low %vm809_vm2, %vm809_vm2  ;;  %s3378_s25 = sld [smem:[#allocation24_spill]]  ;;  %s534_s10 = scalar_lea.vmem [#allocation14], %s2032_s30 }
  0xf5   : > { %2236 = vmatprep.subr.bf16.mxu0 %v2733_v0  ;;  %2244 = vmatprep.subr.bf16.mxu1 %v2243_v10  ;;  %v535_v21 = vld [vmem:[%s3093_s27] sm:$0xff]  ;;  %v2045_v37 = vld [vmem:[#allocation13] ss:$0 sm:$0xff]  ;;  %s2739_s30 = smov [#allocation14]  }
  0xf6   : > { %v539_v24 = vld [vmem:[%s3107_s12 + $0x8] sm:$0xff]  ;;  %v2042_v25 = vld [vmem:[%s3373_s5] ss:$0 sm:$0xff]  ;;  %s3379_s12 = sld [smem:[#allocation32_spill]]  ;;  %s1865_s5 = sshll.u32 %s534_s10, 4  ;;  %s3253_s5 = int_to_ptr.vmem [resolvable:$true] %s1865_s5 }
  0xf7   : > { %v2040_v32 = vld [vmem:[%s3374_s22] ss:$0 sm:$0xff]  ;;  %s3380_s22 = sld [smem:[#allocation33_spill]]  ;;  %s2644_s21 = scalar_lea.vmem %s3253_s5, 128 }
  0xf8   : > { %2238 = vmatpush3.bf16.msra.mxu0 %v2237_v16  ;;  %2246 = vmatpush3.bf16.msra.mxu1 %v2243_v10  ;;  %p2645_p5 = scmp.ne.s32.totalorder %s3253_s5, %s2644_s21 }
  0xf9   : > { %2248 = vmatprep.subr.bf16.mxu0 %v2247_v17  ;;  %2255 = vmatprep.subr.bf16.mxu1 %v2733_v0 }
  0xfa   : > { %p3381_p2 = scmp.ne.s32.totalorder %s3378_s25, 0 }
  0xfb   : > { %2144 = vmatmul.mubr.msk.f32.vlgmr.msra.gmra.mrb[0].mxu1 %vm551_vm1, %v537_v20  ;;  %2133 = vmatmul.mubr.msk.f32.vlgmr.msra.gmra.mrb[0].mxu0 %vm551_vm1, %v535_v21 }
  0xfc   : > { %2250 = vmatpush3.bf16.msra.mxu0 %v2247_v17  ;;  %2154 = vmatprep.mubr.msk.f32.mxu0 %vm551_vm1, %v538_v23  ;;  %p2646_p0 = pnand %p2645_p5, %p3381_p2 }
  0xfd   : > { %2252 = vmatprep.subr.bf16.mxu0 %v2251_v22  ;;  %2161 = vmatprep.mubr.msk.f32.mxu1 %vm2734_vm0, %v2735_v1 }
  0xfe   : > { %p2647_p4 = pneg %p2646_p0 }
 0x100   : > { %2254 = vmatpush3.bf16.msra.mxu0 %v2251_v22 }
 0x101   : > { %2259 = vmatprep.subr.bf16.mxu0 %v2733_v0 }
 0x103   : > { %2155 = vmatmul.mubr.msk.f32.vlgmr.msra.gmra.mrb[2].mxu0 %vm551_vm1, %v539_v24 }
 0x104   : > { %2168 = vmatprep.mubr.msk.f32.mxu0 %vm2734_vm0, %v2735_v1 }
 0x1ce   : > { %v2145_v26 = vpop.f32.mrb[0].mxu1  ;;  %v621_v27 = vpop.f32.mrb[0].mxu0 }
 0x1cf   : > { %v714_v28 = vadd.f32 %v2145_v26, %v2042_v25  ;;  %v708_v29 = vpop.f32.mrb[1].mxu1  ;;  %v2134_v30 = vpop.f32.mrb[1].mxu0  ;;  %v622_v36 = vadd.f32 %v2040_v32, %v621_v27  ;;  %v987_v32 = vld [vmem:[%s3377_s13] sm:$0xff] }
 0x1d0   : > { %v709_v31 = vadd.f32 %v2042_v25, %v708_v29 }
 0x1d2   : > { %v2256_v34 = vpack.c.bf16 %v714_v28, %v709_v31  ;;  %v3149_v35 = vpack.i.bf16 %v714_v28, %v709_v31 }
 0x1d4   : > { %2389 = vrot.lane.b32.xlu0 %v3149_v35, %s2736_s14  ;;  %2258 = vmatpush3.bf16.xpose.msk.msra.mxu1 %vm3145_vm3, %v2256_v34 }
 0x1d5   : > { %2262 = vmatprep.subr.bf16.mxu1 %v2733_v0 }
 0x1d6   : > { %v2156_v38 = vpop.f32.mrb[2].mxu0 }
 0x1d7   : > { %v806_v39 = vadd.f32 %v2156_v38, %v2045_v37  ;;  %v800_v40 = vpop.f32.mrb[3].mxu0 }
 0x1d8   : > { %v801_v41 = vadd.f32 %v2045_v37, %v800_v40  ;;  %988 = vrot.lane.b32.xlu0 %v622_v36, %s2736_s14 }
 0x1da   : > { %v3155_v42 = vpack.i.bf16 %v806_v39, %v801_v41  ;;  %v2260_v8 = vpack.c.bf16 %v806_v39, %v801_v41 }
 0x1db   : > { %2162 = vmatmul.mubr.msk.f32.vlgmr.msra.gmra.mrb[2].mxu1 %vm809_vm2, %v622_v36 }
 0x1dc   : > { %2394 = vrot.lane.b32.xlu0 %v3155_v42, %s2736_s14  ;;  %2175 = vmatprep.mubr.msk.f32.mxu1 %vm2734_vm0, %v2735_v1  ;;  %s3251_s14 = scalar_lea.hbm %s3380_s22, %s2070_s23 }
 0x1dd   : > { %2261 = vmatpush3.bf16.msra.mxu0 %v2260_v8 }
 0x1de   : > { %2266 = vmatprep.subr.bf16.mxu0 %v2733_v0 }
 0x1e0   : > { %1322 = vrot.lane.b32.xlu0 %v622_v36, %s2737_s1 }
 0x1e4   : > { %2404 = vrot.lane.b32.xlu0 %v3149_v35, %s2738_s16 }
 0x1e8   : > { %1582 = vrot.lane.b32.xlu0 %v622_v36, %s2738_s16 }
 0x246   : > { %v2390_v43 = vpop.permute.xlu0 %2389 }
 0x247   : > { %v2392_v44 = vunpack.i.h.bf16 %v2390_v43  ;;  %v2391_v45 = vunpack.i.l.bf16 %v2390_v43 }
 0x249   : > { %v2263_v46 = vpack.c.bf16 %v2392_v44, %v2391_v45  ;;  %v1175_v44 = vld [vmem:[%s3377_s13 + $0x8] sm:$0xff] }
 0x24a   : > { %v989_v47 = vpop.permute.xlu0 %988 }
 0x24b   : > { %2265 = vmatpush3.bf16.xpose.msk.msra.mxu1 %vm3145_vm3, %v2263_v46 }
 0x24c   : > { %2190 = vmatprep.subr.mxu1 %v2735_v1 }
 0x24e   : > { %v2395_v34 = vpop.permute.xlu0 %2394 }
 0x24f   : > { %v2397_v36 = vunpack.i.h.bf16 %v2395_v34  ;;  %v2396_v37 = vunpack.i.l.bf16 %v2395_v34 }
 0x251   : > { %v2267_v39 = vpack.c.bf16 %v2397_v36, %v2396_v37 }
 0x252   : > { %2176 = vmatmul.mubr.msk.f32.vlgmr.msra.gmra.mrb[4].mxu1 %vm809_vm2, %v989_v47 }
 0x253   : > { %2192 = vmatprep.mubr.msk.f32.mxu1 %vm2734_vm0, %v2735_v1  ;;  %2191 = vmatpush3.msra.mxu1 %v987_v32 }
 0x254   : > { %2273 = vmatprep.subr.bf16.mxu1 %v2733_v0 }
 0x2ae   : > { %v885_v48 = vpop.f32.mrb[2].mxu1 }
 0x2af   : > { %v890_v49 = vsel %vm889_vm4, %v885_v48, -inf  ;;  %v2163_v50 = vpop.f32.mrb[3].mxu1 }
 0x2b0   : > { %v891_v51 = vrot.slane %v890_v49, 4 }
 0x2b2   : > { %v892_v52 = vmax.f32 %v890_v49, %v891_v51 }
 0x2b4   : > { %v893_v53 = vrot.slane %v892_v52, 2 }
 0x2b6   : > { %v894_v54 = vmax.f32 %v892_v52, %v893_v53  ;;  %v1323_v52 = vpop.permute.xlu0 %1322 }
 0x2b8   : > { %v895_v55 = vrot.slane %v894_v54, 1 }
 0x2ba   : > { %v896_v56 = vmax.f32 %v894_v54, %v895_v55 }
 0x2bc   : > { %v897_v57 = vsub.f32 %v885_v48, %v896_v56 }
 0x2be   : > { %v898_v58 = vmul.f32 1.442695, %v897_v57  ;;  %v2405_v57 = vpop.permute.xlu0 %2404 }
 0x2c0   : > { %2418 = vpow2.f32 %v898_v58 }
 0x2ca   : > { %v2419_v59 = vpop.eup %2418 }
 0x2cb   : > { %v900_v60 = vsel %vm889_vm4, %v2419_v59, 0.0 }
 0x2cc   : > { %v901_v61 = vrot.slane %v900_v60, 4 }
 0x2ce   : > { %v902_v62 = vadd.f32 %v901_v61, %v900_v60  ;;  %v2406_v60 = vunpack.i.l.bf16 %v2405_v57 }
 0x2d0   : > { %v903_v63 = vrot.slane %v902_v62, 2 }
 0x2d2   : > { %v904_v2 = vadd.f32 %v903_v63, %v902_v62  ;;  %v1583_v62 = vpop.permute.xlu0 %1582 }
 0x2d4   : > { %v905_v3 = vrot.slane %v904_v2, 1 }
 0x2d6   : > { %v906_v4 = vadd.f32 %v905_v3, %v904_v2 }
 0x2d8   : > { %2420 = vrcp.f32 %v906_v4 }
 0x2e2   : > { %v2421_v5 = vpop.eup %2420 }
 0x2e3   : > { %v908_v6 = vmul.f32 %v2421_v5, %v2419_v59  ;;  %v2407_v59 = vunpack.i.h.bf16 %v2405_v57 }
 0x2e5   : > { %v909_v7 = vsel %vm889_vm4, %v908_v6, 0.0  ;;  %v2277_v61 = vpack.c.bf16 %v2407_v59, %v2406_v60 }
 0x2e6   : > { %910 = vadd.xlane.f32.xlu1 %v909_v7 }
 0x325   : > { %v1066_v9 = vpop.f32.mrb[4].mxu1 }
 0x326   : > { %v1070_v10 = vsel %vm889_vm4, %v1066_v9, -inf  ;;  %v2177_v11 = vpop.f32.mrb[5].mxu1 }
 0x327   : > { %v1071_v12 = vrot.slane %v1070_v10, 4 }
 0x329   : > { %v1072_v13 = vmax.f32 %v1070_v10, %v1071_v12 }
 0x32b   : > { %v1073_v14 = vrot.slane %v1072_v13, 2 }
 0x32d   : > { %v1074_v15 = vmax.f32 %v1072_v13, %v1073_v14 }
 0x32f   : > { %v1075_v16 = vrot.slane %v1074_v15, 1 }
 0x331   : > { %v1076_v17 = vmax.f32 %v1074_v15, %v1075_v16 }
 0x333   : > { %v1077_v18 = vsub.f32 %v1066_v9, %v1076_v17 }
 0x335   : > { %v1078_v19 = vmul.f32 1.442695, %v1077_v18 }
 0x337   : > { %2422 = vpow2.f32 %v1078_v19 }
 0x341   : > { %v2423_v20 = vpop.eup %2422 }
 0x342   : > { %v1080_v21 = vsel %vm889_vm4, %v2423_v20, 0.0 }
 0x343   : > { %v1081_v22 = vrot.slane %v1080_v21, 4 }
 0x345   : > { %v1082_v23 = vadd.f32 %v1081_v22, %v1080_v21 }
 0x347   : > { %v1083_v24 = vrot.slane %v1082_v23, 2 }
 0x349   : > { %v1084_v25 = vadd.f32 %v1083_v24, %v1082_v23 }
 0x34b   : > { %v1085_v26 = vrot.slane %v1084_v25, 1 }
 0x34d   : > { %v1086_v27 = vadd.f32 %v1085_v26, %v1084_v25 }
 0x34f   : > { %2424 = vrcp.f32 %v1086_v27 }
 0x359   : > { %v2425_v28 = vpop.eup %2424 }
 0x35a   : > { %v1088_v29 = vmul.f32 %v2425_v28, %v2423_v20 }
 0x35c   : > { %v1089_v30 = vsel %vm889_vm4, %v1088_v29, 0.0 }
 0x35d   : > { %1090 = vadd.xlane.f32.xlu1 %v1089_v30 }
 0x36e   : > { %2399 = vrot.lane.b32.xlu1 %v3149_v35, %s2737_s1 }
 0x372   : > { %2409 = vrot.lane.b32.xlu1 %v3155_v42, %s2737_s1  ;;  %s1852_s1 = scalar_lea.sflag [#allocation4], %s3087_s11 }
 0x373   : > { %v911_v31 = vpop.xlane.xlu1 %910 }
 0x374   : > { %2426 = vrcp.f32 %v911_v31 }
 0x37e   : > { %v2427_v38 = vpop.eup %2426 }
 0x37f   : > { %v913_v40 = vmul.f32 %v2427_v38, %v908_v6 }
 0x381   : > { %2169 = vmatmul.mubr.msk.f32.vlgmr.msra.gmra.mrb[4].mxu0 %vm889_vm4, %v913_v40 }
 0x382   : > { %2268 = vmatpush3.bf16.msra.mxu0 %v2267_v39  ;;  %2182 = vmatprep.mubr.msk.f32.mxu0 %vm2734_vm0, %v2735_v1 }
 0x383   : > { %2185 = vmatprep.subr.mxu0 %v2735_v1 }
 0x3ea   : > { %v1091_v35 = vpop.xlane.xlu1 %1090 }
 0x3eb   : > { %2428 = vrcp.f32 %v1091_v35 }
 0x3ee   : > { %v2400_v45 = vpop.permute.xlu1 %2399 }
 0x3ef   : > { %v2402_v53 = vunpack.i.h.bf16 %v2400_v45  ;;  %v2401_v54 = vunpack.i.l.bf16 %v2400_v45 }
 0x3f1   : > { %v2270_v55 = vpack.c.bf16 %v2402_v53, %v2401_v54  ;;  %v1507_v54 = vld [vmem:[%s3377_s13 + $0x10] sm:$0xff] }
 0x3f2   : > { %v2410_v46 = vpop.permute.xlu1 %2409 }
 0x3f3   : > { %v2412_v47 = vunpack.i.h.bf16 %v2410_v46  ;;  %v2411_v48 = vunpack.i.l.bf16 %v2410_v46 }
 0x3f5   : > { %v2429_v41 = vpop.eup %2428  ;;  %v2274_v49 = vpack.c.bf16 %v2412_v47, %v2411_v48 }
 0x3f6   : > { %v1093_v43 = vmul.f32 %v2429_v41, %v1088_v29 }
 0x3f8   : > { %2183 = vmatmul.mubr.msk.f32.vlgmr.msra.gmra.mrb[6].mxu0 %vm889_vm4, %v1093_v43 }
 0x3f9   : > { %2186 = vmatpush3.msra.mxu0 %v1175_v44  ;;  %2187 = vmatprep.mubr.msk.f32.mxu0 %vm2734_vm0, %v2735_v1 }
 0x3fa   : > { %2269 = vmatprep.subr.bf16.mxu0 %v2733_v0 }
 0x454   : > { %v983_v50 = vpop.f32.mrb[4].mxu0 }
 0x455   : > { %v2170_v51 = vpop.f32.mrb[5].mxu0  ;;  %2193 = vmatmul.mubr.msk.f32.vlgmr.msra.gmra.mrb[6].mxu1 %vm809_vm2, %v983_v50 }
 0x456   : > { %2275 = vmatpush3.bf16.msra.mxu1 %v2274_v49  ;;  %2206 = vmatprep.mubr.msk.f32.mxu1 %vm2734_vm0, %v2735_v1 }
 0x457   : > { %2209 = vmatprep.subr.mxu1 %v2735_v1 }
 0x4cb   : > { %v1171_v56 = vpop.f32.mrb[6].mxu0 }
 0x4cc   : > { %v2184_v58 = vpop.f32.mrb[7].mxu0  ;;  %2188 = vmatmul.mubr.msk.f32.vlgmr.msra.gmra.mrb[8].mxu0 %vm809_vm2, %v1171_v56 }
 0x4cd   : > { %2272 = vmatpush3.bf16.xpose.msk.msra.mxu0 %vm3145_vm3, %v2270_v55  ;;  %2199 = vmatprep.mubr.msk.f32.mxu0 %vm2734_vm0, %v2735_v1 }
 0x4ce   : > { %2276 = vmatprep.subr.bf16.mxu0 %v2733_v0 }
 0x4d4   : > { %2200 = vmatmul.mubr.msk.f32.vlgmr.msra.gmra.mrb[10].mxu0 %vm809_vm2, %v1323_v52 }
 0x4d5   : > { %2279 = vmatpush3.bf16.xpose.msk.msra.mxu0 %vm3145_vm3, %v2277_v61  ;;  %2218 = vmatprep.mubr.msk.f32.mxu0 %vm2734_vm0, %v2735_v1 }
 0x4dc   : > { %2219 = vmatmul.mubr.msk.f32.vlgmr.msra.gmra.mrb[12].mxu0 %vm809_vm2, %v1583_v62 }
 0x528   : > { %v1318_v63 = vpop.f32.mrb[6].mxu1 }
 0x529   : > { %v2194_v2 = vpop.f32.mrb[7].mxu1 }
 0x59f   : > { %v1245_v3 = vpop.f32.mrb[8].mxu0 }
 0x5a0   : > { %v3213_v4 = vadd.f32 %v1318_v63, %v1245_v3  ;;  %v2189_v5 = vpop.f32.mrb[9].mxu0 }
 0x5a7   : > { %v1400_v6 = vpop.f32.mrb[10].mxu0 }
 0x5a8   : > { %v1404_v7 = vsel %vm889_vm4, %v1400_v6, -inf  ;;  %v2201_v8 = vpop.f32.mrb[11].mxu0 }
 0x5a9   : > { %v1405_v9 = vrot.slane %v1404_v7, 4 }
 0x5ab   : > { %v1406_v10 = vmax.f32 %v1404_v7, %v1405_v9 }
 0x5ad   : > { %v1407_v33 = vrot.slane %v1406_v10, 2 }
 0x5af   : > { %v1408_v11 = vmax.f32 %v1406_v10, %v1407_v33  ;;  %v1660_v12 = vpop.f32.mrb[12].mxu0 }
 0x5b0   : > { %v1664_v13 = vsel %vm889_vm4, %v1660_v12, -inf  ;;  %v2220_v14 = vpop.f32.mrb[13].mxu0 }
 0x5b1   : > { %v1409_v15 = vrot.slane %v1408_v11, 1  ;;  %v1665_v16 = vrot.slane %v1664_v13, 4 }
 0x5b3   : > { %v1410_v17 = vmax.f32 %v1408_v11, %v1409_v15  ;;  %v1666_v18 = vmax.f32 %v1664_v13, %v1665_v16 }
 0x5b5   : > { %v1411_v19 = vsub.f32 %v1400_v6, %v1410_v17  ;;  %v1667_v20 = vrot.slane %v1666_v18, 2 }
 0x5b7   : > { %v1412_v21 = vmul.f32 1.442695, %v1411_v19  ;;  %v1668_v22 = vmax.f32 %v1666_v18, %v1667_v20 }
 0x5b9   : > { %2430 = vpow2.f32 %v1412_v21  ;;  %v1669_v23 = vrot.slane %v1668_v22, 1 }
 0x5bb   : > { %v1670_v24 = vmax.f32 %v1668_v22, %v1669_v23 }
 0x5bd   : > { %v1671_v25 = vsub.f32 %v1660_v12, %v1670_v24 }
 0x5bf   : > { %v1672_v26 = vmul.f32 1.442695, %v1671_v25 }
 0x5c1   : > { %2432 = vpow2.f32 %v1672_v26 }
 0x5c3   : > { %v2431_v27 = vpop.eup %2430 }
 0x5c4   : > { %v1414_v28 = vsel %vm889_vm4, %v2431_v27, 0.0 }
 0x5c5   : > { %v1415_v29 = vrot.slane %v1414_v28, 4 }
 0x5c7   : > { %v1416_v30 = vadd.f32 %v1415_v29, %v1414_v28 }
 0x5c9   : > { %v1417_v31 = vrot.slane %v1416_v30, 2 }
 0x5cb   : > { %v2433_v32 = vpop.eup %2432  ;;  %v1418_v34 = vadd.f32 %v1417_v31, %v1416_v30 }
 0x5cc   : > { %v1674_v36 = vsel %vm889_vm4, %v2433_v32, 0.0 }
 0x5cd   : > { %v1675_v37 = vrot.slane %v1674_v36, 4  ;;  %v1419_v38 = vrot.slane %v1418_v34, 1 }
 0x5cf   : > { %v1676_v39 = vadd.f32 %v1675_v37, %v1674_v36  ;;  %v1420_v40 = vadd.f32 %v1419_v38, %v1418_v34 }
 0x5d1   : > { %v1677_v35 = vrot.slane %v1676_v39, 2  ;;  %2434 = vrcp.f32 %v1420_v40 }
 0x5d3   : > { %v1678_v41 = vadd.f32 %v1677_v35, %v1676_v39 }
 0x5d5   : > { %v1679_v43 = vrot.slane %v1678_v41, 1 }
 0x5d7   : > { %v1680_v44 = vadd.f32 %v1679_v43, %v1678_v41 }
 0x5d9   : > { %2436 = vrcp.f32 %v1680_v44 }
 0x5db   : > { %v2435_v45 = vpop.eup %2434 }
 0x5dc   : > { %v1422_v46 = vmul.f32 %v2435_v45, %v2431_v27 }
 0x5de   : > { %v1423_v47 = vsel %vm889_vm4, %v1422_v46, 0.0 }
 0x5df   : > { %1424 = vadd.xlane.f32.xlu0 %v1423_v47 }
 0x5e3   : > { %v2437_v48 = vpop.eup %2436 }
 0x5e4   : > { %v1682_v49 = vmul.f32 %v2437_v48, %v2433_v32 }
 0x5e6   : > { %v1683_v50 = vsel %vm889_vm4, %v1682_v49, 0.0 }
 0x5e7   : > { %1684 = vadd.xlane.f32.xlu1 %v1683_v50 }
 0x5f5   : > { %2414 = vrot.lane.b32.xlu0 %v3155_v42, %s2738_s16  ;;  %s2648_s16 = sshll.u32 %s2739_s30, 4  ;;  %s2649_s16 = int_to_ptr.vmem [resolvable:$false] %s2648_s16 }
 0x5f6   : > { %s2650_s15 = scalar_lea.vmem %s2649_s16, 256  ;;  %p2651_p11 = scmp.lt.s32.totalorder %s3253_s5, %s2649_s16 }
 0x5f7   : > { %p2652_p7 = scmp.lt.s32.totalorder %s2650_s15, %s2644_s21 }
 0x5f9   : > { %p2653_p9 = por %p2652_p7, %p2651_p11 }
 0x5fb   : > { %p2654_p12 = pnand %p2653_p9, %p2647_p4 }
 0x66c   : > { %v1425_v51 = vpop.xlane.xlu0 %1424 }
 0x66d   : > { %2438 = vrcp.f32 %v1425_v51 }
 0x670   : > { %v2415_v56 = vpop.permute.xlu0 %2414 }
 0x671   : > { %v2417_v42 = vunpack.i.h.bf16 %v2415_v56  ;;  %v2416_v57 = vunpack.i.l.bf16 %v2415_v56 }
 0x673   : > { %v2281_v59 = vpack.c.bf16 %v2417_v42, %v2416_v57 }
 0x674   : > { %v1685_v55 = vpop.xlane.xlu1 %1684 }
 0x675   : > { %2440 = vrcp.f32 %v1685_v55 }
 0x677   : > { %v2439_v52 = vpop.eup %2438 }
 0x678   : > { %v1427_v53 = vmul.f32 %v2439_v52, %v1422_v46 }
 0x67a   : > { %2207 = vmatmul.mubr.msk.f32.vlgmr.msra.gmra.mrb[8].mxu1 %vm889_vm4, %v1427_v53 }
 0x67b   : > { %2210 = vmatpush3.msra.mxu1 %v1507_v54  ;;  %2211 = vmatprep.mubr.msk.f32.mxu1 %vm2734_vm0, %v2735_v1 }
 0x67c   : > { %2280 = vmatprep.subr.bf16.mxu1 %v2733_v0  ;;  %v1767_v0 = vld [vmem:[%s3377_s13 + $0x18] sm:$0xff] }
 0x67f   : > { %v2441_v58 = vpop.eup %2440 }
 0x680   : > { %v1687_v62 = vmul.f32 %v2441_v58, %v1682_v49 }
 0x74d   : > { %v1503_v60 = vpop.f32.mrb[8].mxu1 }
 0x74e   : > { %v2208_v61 = vpop.f32.mrb[9].mxu1  ;;  %2212 = vmatmul.mubr.msk.f32.vlgmr.msra.gmra.mrb[10].mxu1 %vm809_vm2, %v1503_v60 }
 0x74f   : > { %2282 = vmatpush3.bf16.msra.mxu1 %v2281_v59  ;;  %2225 = vmatprep.mubr.msk.f32.mxu1 %vm2734_vm0, %v2735_v1 }
 0x750   : > { %2228 = vmatprep.subr.mxu1 %v2735_v1 }
 0x752   : > { %2226 = vmatmul.mubr.msk.f32.vlgmr.msra.gmra.mrb[12].mxu1 %vm889_vm4, %v1687_v62 }
 0x753   : > { %2230 = vmatprep.mubr.msk.f32.mxu1 %vm2734_vm0, %v2735_v1  ;;  %2229 = vmatpush3.msra.mxu1 %v1767_v0  ;;  %v2068_v1 = vld [vmem:[%s3379_s12] ss:$0 sm:$0xff] }
 0x821   : > { %v1577_v63 = vpop.f32.mrb[10].mxu1 }
 0x822   : > { %v1581_v2 = vadd.f32 %v1577_v63, %v3213_v4  ;;  %v2213_v3 = vpop.f32.mrb[11].mxu1 }
 0x825   : > { %v1763_v5 = vpop.f32.mrb[12].mxu1 }
 0x826   : > { %v2227_v6 = vpop.f32.mrb[13].mxu1  ;;  %2231 = vmatmul.mubr.msk.f32.vlgmr.msra.gmra.mrb[14].mxu1 %vm809_vm2, %v1763_v5 }
 0x8f9   : > { %v1837_v7 = vpop.f32.mrb[14].mxu1 }
 0x8fa   : > { %v1841_v8 = vadd.f32 %v1837_v7, %v1581_v2  ;;  %v2232_v9 = vpop.f32.mrb[15].mxu1 }
 0x8fc   : > { %v1849_v10 = vadd.f32 %v2068_v1, %v1841_v8 }
 0x8fe   : > { %1850 = vst.msk [vmem:[%s534_s10] sm:$0xff] %vm551_vm1, %v1849_v10 }
 0x8ff   : > { %2657 = shalt.err (!%p2654_p12)
}
 0x900   : > { %s2658_s11 = scalar_lea.hbm %s3251_s14, 128  ;;  %s2662_s28 = scalar_lea.hbm %s3380_s22, 256 }
 0x901   : > { %p2659_p8 = scmp.ne.s32.totalorder %s3251_s14, %s2658_s11  ;;  %p2663_p1 = scmp.lt.u32.totalorder %s3251_s14, %s3380_s22 }
 0x902   : > { %p2664_p6 = scmp.lt.u32.totalorder %s2662_s28, %s2658_s11  ;;  %p2666_p5 = scmp.lt.u32.totalorder %s2658_s11, %s3251_s14 }
 0x903   : > { %p2660_p10 = pnand %p2659_p8, %p3381_p2 }
 0x904   : > { %p2665_p3 = por %p2664_p6, %p2663_p1 }
 0x905   : > { %p2661_p13 = pneg %p2660_p10 }
 0x906   : > { %p2667_p0 = por %p2666_p5, %p2665_p3 }
 0x908   : > { %p2668_p4 = pnand %p2667_p0, %p2661_p13 }
 0x90a   : > { %2671 = shalt.err (!%p2668_p4)
}
 0x90b   : > { %2305 = dma.vmem_to_hbm [thread:$0]  (%p3381_p2), %s3253_s5, 128, %s3251_s14, %s1852_s1  }
 0x90c PF: > { %s3382_s27 = sld [smem:[#allocation20_spill]]  ;;  %s3383_s19 = sld [smem:[#allocation22_spill]] }
 0x90d   : > { %p3385_p7 = scmp.ge.s32.totalorder %s2722_s20, 2 }
 0x912   : > { %s1877_s26 = sand.u32 1, %s3382_s27   ;;  %p3384_p11 = scmp.ne.s32.totalorder %s3383_s19, 0 }
 0x913   : > { %s1878_s17 = scalar_lea.sflag [#allocation4], %s1877_s26 }
 0x914   : > { %p2331_p9 = pnand %p3385_p7, %p3384_p11 }
 0x916   : > { %2705 = dma.done.wait (!%p2331_p9), %s1878_s17, 128  }
 0x917   : > { %2707 = vsyncadd (!%p2331_p9), %s1878_s17, 4294967168  ;;  %s3386_s20 = sld [smem:[#allocation23_spill]]  ;;  %s3387_s12 = sld [smem:[#allocation21_spill]] }
 0x918   : > { %s3388_s19 = sld [smem:[#allocation25_spill]]  ;;  %s3389_s17 = smov %s2714_s18 }
 0x91d   : > { %p29_p12 = scmp.ge.s32.totalorder %s3386_s20, 4   ;;  %s3390_s18 = smov %s3387_s12 }
 0x91f   :  { %31 = sbr.rel (!%p29_p12) target bundleno = 18 (0x12), region = 149 }
 0x926   :  { %1883 = vsyncpa [#allocation3], 1 }
 0x927   :  { %1885 = vsyncpa [#allocation3 + $0x1], 1 }
 0x928   :  { %1886 = vsyncpa [#allocation6], 1 }
 0x929   :  { %1888 = vsyncpa [#allocation6 + $0x1], 1 }
 0x92a   :  { %1889 = vsyncpa [#allocation9], 1 }
 0x92b   :  { %1890 = vsyncpa [#allocation12], 1 }
 0x92c   :  { %1891 = vsyncpa [#allocation4], 1 }
 0x92d   :  { %1893 = vsyncpa [#allocation4 + $0x1], 1 }

</bundles_post_ra>
